<compile_context>
chip_gen: v7x
topology: tpu7x:2x2x1
jax: 0.10.0
libtpu: 0.0.40
codegen_flags: <defaults>
</compile_context>

<pallas_src>
import math
from functools import lru_cache

import numpy as np
import jax
import jax.numpy as jnp
from jax import lax
from jax.experimental import pallas as pl
from jax.experimental.pallas import tpu as pltpu


def _round_up(x, m):
    return (x + m - 1) // m * m


# ---------------------------------------------------------------------------
# Pallas kernel 1: mask -> normalized center of mass (MXU spatial reduction).
# Stands in for `compute_centers(masks, normalize=True)` from the reference.
# TODO(synk): original compute_centers source not provided; centroid over the
#             binary mask normalized to [0, 1] is assumed (all-zero mask -> 0).
# ---------------------------------------------------------------------------
def _centers_kernel(m_ref, coef_ref, scale_ref, o_ref):
    # m_ref:     (TR, HW)  native mask dtype (int8/uint8/float...) flattened masks
    # coef_ref:  (HW, 128) bf16  col0 = y index, col1 = x index,
    #                            cols {2,3,126,127} = 1 (mask area), rest 0
    # scale_ref: (1, 2)    f32   [1/(H-1), 1/(W-1)]
    # o_ref:     (TR, 2)   f32   (cy, cx) in [0, 1]; all-zero mask -> (0, 0)
    #
    # In-kernel cast (VPU): binary masks are exact in bf16; two-step cast keeps
    # the conversion chain trivially lowerable for any integer/float input.
    m = m_ref[...].astype(jnp.float32).astype(jnp.bfloat16)
    r = jnp.dot(m, coef_ref[...], preferred_element_type=jnp.float32)   # (TR, 128)
    # The mask-area (ones) column is duplicated at lanes {2,3} and {126,127},
    # so a roll by 126 brings it under lanes 0/1 for either rotation-direction
    # convention.  (coef layout and this shift must stay in sync.)
    tot = pltpu.roll(r, shift=126, axis=1)[:, :2]                       # (TR, 2)
    inv = pl.reciprocal(jnp.maximum(tot, 1.0), approx=True)             # EUP slot
    o_ref[...] = jnp.where(tot > 0.0, r[:, :2] * inv * scale_ref[...], 0.0)


@lru_cache(maxsize=8)
def _center_coef(H, W):
    # Built with numpy + cached so repeated forwards do not re-dispatch tiny ops.
    ys = np.repeat(np.arange(H, dtype=np.float32), W)
    xs = np.tile(np.arange(W, dtype=np.float32), H)
    coef = np.zeros((H * W, 128), np.float32)
    coef[:, 0] = ys
    coef[:, 1] = xs
    coef[:, [2, 3, 126, 127]] = 1.0                  # mask-area columns
    scale = np.array([[1.0 / max(H - 1, 1), 1.0 / max(W - 1, 1)]], np.float32)
    return jnp.asarray(coef, dtype=jnp.bfloat16), jnp.asarray(scale)


def compute_centers(masks_flat, H, W, max_tile_rows=1024, vmem_budget=20 << 20):
    """masks_flat: (BM, H*W) binary masks in their native dtype (int8 preferred).
    Returns (BM, 2) f32 normalized (cy, cx); all-zero masks map to (0, 0)."""
    BM, HW = masks_flat.shape
    assert HW == H * W
    # Integer pixel-index coefficients must be exact in bf16.
    assert H <= 256 and W <= 256, "bf16 coefficient path requires H, W <= 256"

    if masks_flat.dtype == jnp.bool_:                # bool VMEM tiles are awkward
        masks_flat = masks_flat.astype(jnp.int8)

    itemsize = jnp.dtype(masks_flat.dtype).itemsize
    # VMEM budget per row: double-buffered input block + cast intermediates
    # (f32 + bf16 copies of the block) + f32 MXU result + (TR, 2) output.
    per_row = 2 * HW * itemsize + HW * 4 + HW * 2 + 128 * 4 + 16
    TR = max(min(vmem_budget // per_row, max_tile_rows), 8)
    # Keep >= 2 grid steps so both v7x TensorCores get work.
    TR = min(TR, _round_up(pl.cdiv(BM, 2), 8))
    TR = _round_up(TR, 8)
    grid = pl.cdiv(BM, TR)      # partial last block: rows are independent and the
                                # out-of-range output rows are dropped by Pallas.

    coef, scale = _center_coef(H, W)

    return pl.pallas_call(
        _centers_kernel,
        out_shape=jax.ShapeDtypeStruct((BM, 2), jnp.float32),
        grid=(grid,),
        in_specs=[
            pl.BlockSpec((TR, HW), lambda i: (i, 0)),
            pl.BlockSpec((HW, 128), lambda i: (0, 0)),   # resident
            pl.BlockSpec((1, 2), lambda i: (0, 0)),      # resident
        ],
        out_specs=pl.BlockSpec((TR, 2), lambda i: (i, 0)),
        compiler_params=pltpu.CompilerParams(
            dimension_semantics=("parallel",),
            vmem_limit_bytes=32 * 1024 * 1024,
        ),
    )(masks_flat, coef, scale)


# ---------------------------------------------------------------------------
# Pallas kernel 2 (fused): trajectory gather + Linear(in, vw//4) -> ReLU ->
# Linear(vw//4, vw).  One grid step per batch element; the per-batch center
# table (T, N) is resident in VMEM and the gather is a one-hot select over N,
# so no (bs*M, T*d) intermediate ever touches HBM.
# ---------------------------------------------------------------------------
def _graph_mlp_kernel(vg_ref, cy_ref, cx_ref, w1_ref, b1_ref, w2_ref, b2_ref, o_ref):
    # vg_ref: (1, M, T) int32  trajectory -> object index per frame (one batch)
    # cy_ref: (1, T, N) f32    per-object center y for this batch
    # cx_ref: (1, T, N) f32    per-object center x for this batch
    # w1_ref: (2T, H1p) bf16   Linear1 weights, rows permuted to [cy_0..T-1 | cx_0..T-1]
    # b1_ref: (1, H1p)  f32 ;  w2_ref: (H1p, D) bf16 ;  b2_ref: (1, D) f32
    # o_ref:  (1, M, D) bf16
    vg = vg_ref[0]                                           # (M, T) int32
    m_rows, t_frames = vg.shape
    n_obj = cy_ref.shape[2]

    n_iota = lax.broadcasted_iota(jnp.int32, (m_rows, t_frames, n_obj), 2)
    onehot = vg[:, :, None] == n_iota                        # (M, T, N)
    xy = jnp.sum(jnp.where(onehot, cy_ref[0][None], 0.0), axis=2)   # (M, T)
    xx = jnp.sum(jnp.where(onehot, cx_ref[0][None], 0.0), axis=2)   # (M, T)
    x = jnp.concatenate([xy, xx], axis=1).astype(jnp.bfloat16)      # (M, 2T)

    h = jnp.dot(x, w1_ref[...], preferred_element_type=jnp.float32) + b1_ref[...]
    h = jnp.maximum(h, 0.0).astype(jnp.bfloat16)
    y = jnp.dot(h, w2_ref[...], preferred_element_type=jnp.float32) + b2_ref[...]
    o_ref[0] = y.astype(o_ref.dtype)


# ---------------------------------------------------------------------------
# PosEncoder (model_type='mlp')
# ---------------------------------------------------------------------------
class PosEncoderPallas:
    def __init__(self, vision_width=64, num_frames=8, use_bounding_box=False, key=None):
        # TODO(synk): compute_bounding_boxes / use_bounding_box=True branch and the
        #             'perceiver' / 'sincos' model types are not implemented.
        assert not use_bounding_box
        self.vision_width = vision_width
        self.num_frames = num_frames
        d = 2
        in_features = d * num_frames
        hidden = vision_width // 4
        H1p = _round_up(hidden, 128)
        self.h1_pad = H1p

        # PyTorch nn.Linear default init: W, b ~ U(-1/sqrt(fan_in), +1/sqrt(fan_in)).
        k1, k2, k3, k4 = jax.random.split(key, 4)
        s1 = 1.0 / math.sqrt(in_features)
        s2 = 1.0 / math.sqrt(hidden)
        w1 = jax.random.uniform(k1, (in_features, hidden), jnp.float32, -s1, s1)
        b1 = jax.random.uniform(k2, (hidden,), jnp.float32, -s1, s1)
        w2 = jax.random.uniform(k3, (hidden, vision_width), jnp.float32, -s2, s2)
        b2 = jax.random.uniform(k4, (vision_width,), jnp.float32, -s2, s2)

        # Permute Linear1 rows from interleaved (t*2 + c) to [all cy_t | all cx_t]
        # so the fused kernel can build its input as concat([cy_0..T-1, cx_0..T-1]).
        T = num_frames
        perm = jnp.concatenate([jnp.arange(0, 2 * T, 2), jnp.arange(1, 2 * T, 2)])
        w1p = w1[perm]

        # bf16 weights for the MXU (f32 accumulate in-kernel); hidden padded to
        # 128 lanes with zeros (exact), output features kept unpadded.
        self.w1 = jnp.zeros((2 * T, H1p), jnp.bfloat16).at[:, :hidden].set(
            w1p.astype(jnp.bfloat16))
        self.b1 = jnp.zeros((1, H1p), jnp.float32).at[:, :hidden].set(b1)
        self.w2 = jnp.zeros((H1p, vision_width), jnp.bfloat16).at[:hidden].set(
            w2.astype(jnp.bfloat16))
        self.b2 = b2.reshape(1, vision_width)
        # f32 copies for the pure-JAX reference.
        self._w1, self._b1, self._w2, self._b2 = w1, b1, w2, b2

    def __call__(self, video_graph, segmasks):
        # segmasks: (bs, T, N, H, W) binary masks (int8/uint8/float all accepted);
        # video_graph: (bs, M, T) object indices.
        # TODO(synk): 4-D segmasks -> decompose_masks path of the reference not implemented.
        bs, T, N, H, W = segmasks.shape
        M = video_graph.shape[1]

        # 1) mask -> normalized center of mass (Pallas, MXU spatial reduction).
        #    The reshape is metadata-only; the kernel reads native-dtype masks.
        coords = compute_centers(segmasks.reshape(bs * T * N, H * W), H, W)
        c4 = coords.reshape(bs, T, N, 2)
        cy, cx = c4[..., 0], c4[..., 1]                  # tiny (bs, T, N) slices

        # 2+3) trajectory gather + 'b M t d -> (b M)(t d)' + Linear/ReLU/Linear,
        #      fused into a single pallas_call (one grid step per batch element).
        # NOTE: padding_mask / all_ones_rows in the reference only feed the
        # 'perceiver' branch and do not affect the 'mlp' output.
        vg = video_graph.astype(jnp.int32)
        D = self.vision_width
        H1p = self.h1_pad
        out = pl.pallas_call(
            _graph_mlp_kernel,
            out_shape=jax.ShapeDtypeStruct((bs, M, D), jnp.bfloat16),
            grid=(bs,),
            in_specs=[
                pl.BlockSpec((1, M, T), lambda b: (b, 0, 0)),
                pl.BlockSpec((1, T, N), lambda b: (b, 0, 0)),
                pl.BlockSpec((1, T, N), lambda b: (b, 0, 0)),
                pl.BlockSpec((2 * T, H1p), lambda b: (0, 0)),   # weights resident
                pl.BlockSpec((1, H1p), lambda b: (0, 0)),
                pl.BlockSpec((H1p, D), lambda b: (0, 0)),
                pl.BlockSpec((1, D), lambda b: (0, 0)),
            ],
            out_specs=pl.BlockSpec((1, M, D), lambda b: (b, 0, 0)),
            compiler_params=pltpu.CompilerParams(
                dimension_semantics=("parallel",),
            ),
        )(vg, cy, cx, self.w1, self.b1, self.w2, self.b2)
        return out                                       # (bs, M, vision_width) bf16

    # pure-JAX f32 reference for the correctness check
    def reference(self, video_graph, segmasks):
        bs, T, N, H, W = segmasks.shape
        M = video_graph.shape[1]
        m = segmasks.reshape(bs * T * N, H, W).astype(jnp.float32)
        ys = jnp.arange(H, dtype=jnp.float32)[None, :, None]
        xs = jnp.arange(W, dtype=jnp.float32)[None, None, :]
        tot = m.sum((1, 2))
        denom = jnp.maximum(tot, 1.0)
        valid = (tot > 0).astype(jnp.float32)
        cy = (m * ys).sum((1, 2)) / denom / max(H - 1, 1) * valid
        cx = (m * xs).sum((1, 2)) / denom / max(W - 1, 1) * valid
        coords = jnp.stack([cy, cx], -1).reshape(bs, T, N, 2)
        b_idx = jnp.arange(bs)[:, None, None]
        t_idx = jnp.arange(T)[None, None, :]
        gc = coords[b_idx, t_idx, video_graph].reshape(bs * M, T * 2)
        h = jnp.maximum(gc @ self._w1 + self._b1, 0.0)
        y = h @ self._w2 + self._b2
        return y.reshape(bs, M, self.vision_width)


if __name__ == "__main__":
    key = jax.random.PRNGKey(0)
    k_mask, k_graph, k_params = jax.random.split(key, 3)

    bs, T, N, Hs, Ws = 2, 8, 4, 16, 16     # batch, frames, objects, spatial
    M = 3                                  # number of graph trajectories
    vision_width = 64

    # Binary masks shipped as int8: 1 B/elem HBM reads, cast to bf16 in-kernel.
    segmasks = (jax.random.uniform(k_mask, (bs, T, N, Hs, Ws)) > 0.5).astype(jnp.int8)
    video_graph = jax.random.randint(k_graph, (bs, M, T), 0, N)

    enc = PosEncoderPallas(vision_width=vision_width, num_frames=T,
                           use_bounding_box=False, key=k_params)
    out = enc(video_graph, segmasks)
    jax.block_until_ready(out)
    assert out.shape == (bs, M, vision_width), out.shape
    assert out.dtype == jnp.bfloat16, out.dtype

    ref = enc.reference(video_graph, segmasks)
    err = float(jnp.max(jnp.abs(out.astype(jnp.float32) - ref)))
    assert err < 5e-2, f"max abs err {err}"
    print("KERNEL_OK")
</pallas_src>

<mosaic_0001>
module attributes {stable_mosaic.version = 11 : i64} {
  func.func @_centers_kernel(%arg0: i32, %arg1: memref<32x256xi8, #tpu.memory_space<vmem>>, %arg2: memref<256x128xbf16, #tpu.memory_space<vmem>>, %arg3: memref<1x2xf32, #tpu.memory_space<vmem>>, %arg4: memref<32x2xf32, #tpu.memory_space<vmem>>) attributes {dimension_semantics = [#tpu.dimension_semantics<parallel>], iteration_bounds = array<i64: 2>, scalar_prefetch = 0 : i64, scratch_operands = 0 : i64, tpu.core_type = #tpu.core_type<tc>, window_params = [{transform_indices = @transform_0, window_bounds = array<i64: 32, 256>}, {pipeline_mode = #tpu.pipeline_mode<synchronous>, transform_indices = @transform_1, window_bounds = array<i64: 256, 128>}, {pipeline_mode = #tpu.pipeline_mode<synchronous>, transform_indices = @transform_2, window_bounds = array<i64: 1, 2>}, {transform_indices = @transform_3, window_bounds = array<i64: 32, 2>}]} {
    %c0 = arith.constant 0 : index
    %c0_0 = arith.constant 0 : index
    %0 = vector.load %arg1[%c0, %c0_0] : memref<32x256xi8, #tpu.memory_space<vmem>>, vector<32x256xi8>
    %1 = arith.sitofp %0 : vector<32x256xi8> to vector<32x256xf32>
    %2 = arith.truncf %1 : vector<32x256xf32> to vector<32x256xbf16>
    %c0_1 = arith.constant 0 : index
    %c0_2 = arith.constant 0 : index
    %3 = vector.load %arg2[%c0_1, %c0_2] : memref<256x128xbf16, #tpu.memory_space<vmem>>, vector<256x128xbf16>
    %cst = arith.constant dense<0.000000e+00> : vector<32x128xf32>
    %4 = tpu.matmul %2, %3, %cst {dimension_numbers = #tpu.dot_dimension_numbers<[1], [0], [0], [1], [0, 0, 1, 1], [], []>} : vector<32x256xbf16>, vector<256x128xbf16>, vector<32x128xf32> -> vector<32x128xf32>
    %c126_i32 = arith.constant 126 : i32
    %5 = tpu.dynamic_rotate %4 by %c126_i32 dim 1 : vector<32x128xf32>, i32 -> vector<32x128xf32>
    %6 = vector.extract_strided_slice %5 {offsets = [0, 0], sizes = [32, 2], strides = [1, 1]} : vector<32x128xf32> to vector<32x2xf32>
    %cst_3 = arith.constant 1.000000e+00 : f32
    %7 = vector.broadcast %cst_3 : f32 to vector<32x2xf32>
    %8 = arith.maximumf %6, %7 : vector<32x2xf32>
    %9 = tpu.reciprocal %8 {approx = true} : vector<32x2xf32> -> vector<32x2xf32>
    %cst_4 = arith.constant 0.000000e+00 : f32
    %10 = vector.broadcast %cst_4 : f32 to vector<32x2xf32>
    %11 = arith.cmpf ogt, %6, %10 : vector<32x2xf32>
    %12 = vector.extract_strided_slice %4 {offsets = [0, 0], sizes = [32, 2], strides = [1, 1]} : vector<32x128xf32> to vector<32x2xf32>
    %13 = arith.mulf %12, %9 : vector<32x2xf32>
    %c0_5 = arith.constant 0 : index
    %c0_6 = arith.constant 0 : index
    %14 = vector.load %arg3[%c0_5, %c0_6] : memref<1x2xf32, #tpu.memory_space<vmem>>, vector<1x2xf32>
    %15 = vector.broadcast %14 : vector<1x2xf32> to vector<32x2xf32>
    %16 = arith.mulf %13, %15 : vector<32x2xf32>
    %cst_7 = arith.constant 0.000000e+00 : f32
    %17 = vector.broadcast %cst_7 : f32 to vector<32x2xf32>
    %18 = arith.select %11, %16, %17 : vector<32x2xi1>, vector<32x2xf32>
    %c0_8 = arith.constant 0 : index
    %c0_9 = arith.constant 0 : index
    %19 = vector.load %arg4[%c0_8, %c0_9] : memref<32x2xf32, #tpu.memory_space<vmem>>, vector<32x2xf32>
    tpu.vector_store %arg4[%c0_8, %c0_9], %18 {strides = array<i32>} : memref<32x2xf32, #tpu.memory_space<vmem>>, vector<32x2xf32>,
    return
  }
  func.func @transform_0(%arg0: i32) -> (i32, i32) {
    %c0_i32 = arith.constant 0 : i32
    %c0_i32_0 = arith.constant 0 : i32
    return %arg0, %c0_i32 : i32, i32
  }
  func.func @transform_1(%arg0: i32) -> (i32, i32) {
    %c0_i32 = arith.constant 0 : i32
    %c0_i32_0 = arith.constant 0 : i32
    %c0_i32_1 = arith.constant 0 : i32
    return %c0_i32, %c0_i32_0 : i32, i32
  }
  func.func @transform_2(%arg0: i32) -> (i32, i32) {
    %c0_i32 = arith.constant 0 : i32
    %c0_i32_0 = arith.constant 0 : i32
    %c0_i32_1 = arith.constant 0 : i32
    return %c0_i32, %c0_i32_0 : i32, i32
  }
  func.func @transform_3(%arg0: i32) -> (i32, i32) {
    %c0_i32 = arith.constant 0 : i32
    %c0_i32_0 = arith.constant 0 : i32
    return %arg0, %c0_i32 : i32, i32
  }
}

</mosaic_0001>

<bundles_post_ra>
// kernel: tpu_custom_call.1
= control target key start
LH: loop header
LB: loop body
LE: loop exit
PB: predicated region body
PF: predicated region fallthrough
CT: control target
= control target key end

     0   :  { %8 = vsyncpa [#allocation3], 0  ;;  %s943_s0 = inlined_call_operand.hbm [shape: s8[64,256], index: 0, kind: input, shape index: {}]   ;;  %s944_s1 = inlined_call_operand.hbm [shape: bf16[256,128], index: 1, kind: input, shape index: {}]   ;;  %s945_s2 = inlined_call_operand.vmem [shape: f32[1,2], index: 2, kind: input, shape index: {}]   ;;  %s946_s3 = inlined_call_operand.vmem [shape: f32[64,2], index: 3, kind: output, shape index: {}]  }
   0x1   :  { %10 = vsyncpa [#allocation3 + $0x1], 0 }
   0x2   :  { %11 = vsyncpa [#allocation5], 0  ;;  %s787_s12 = smov 0   ;;  %s789_s13 = smov 0  }
   0x3   :  { %s791_s14 = smov 0   ;;  %s793_s15 = smov 0  }
   0x4 LB: > { %s510_s16 = sadd.s32 4294967295, %s760_s15   ;;  %p37_p0 = scmp.ne.s32.totalorder %s752_s13, %s748_s12  ;;  %s760_s15 = sphi %s793_s15, %s962_s15   ;;  %s756_s14 = sphi %s791_s14, %s961_s14   ;;  %s752_s13 = sphi %s789_s13, %s960_s13   ;;  %s748_s12 = sphi %s787_s12, %s959_s12  }
   0x5   : > { %p809_p1 = scmp.eq.s32.totalorder %s510_s16, 0  ;;  %p512_p2 = scmp.ge.s32.totalorder %s760_s15, 1 }
   0x6   : > { %p116_p3 = scmp.lt.s32.totalorder %s760_s15, 3  ;;  %s762_s20 = smov [#allocation4]  }
   0x7   : > { %s951_s17 = scalar_select %p809_p1, 1, 0 }
   0x8   : > { %p817_p4 = por %p809_p1, %p37_p0  ;;  %p821_p5 = pnand %p512_p2, %p116_p3 }
   0x9   : > { %s128_s21 = sshll.u32 %s762_s20, 4  ;;  %s834_s23 = sadd.s32 1, %s760_s15   ;;  %s129_s21 = int_to_ptr.vmem [resolvable:$true] %s128_s21 }
   0xa   : > { %s952_s18 = scalar_select %p817_p4, 1, 0 }
   0xb   : > { %s953_s19 = scalar_select %p821_p5, 1, 0 }
   0xc   : > { %p593_p6 = pneg %p821_p5  ;;  %s24_s24 = sadd.s32 1, %s756_s14 }
   0xd   : > { %s21_s25 = ssub.s32 %s760_s15, %s834_s23  ;;  %s664_s28 = scalar_lea.hbm %s944_s1, 2048 }
   0xe   : > { %p829_p7 = pnand %p593_p6, %p809_p1  ;;  %p665_p8 = scmp.ne.s32.totalorder %s944_s1, %s664_s28 }
   0xf   : > { %p671_p12 = scmp.lt.u32.totalorder %s664_s28, %s944_s1 }
  0x10   : > { %p666_p9 = pneg %p829_p7 }
  0x12   : > { %p667_p10 = pnand %p666_p9, %p665_p8 }
  0x14   : > { %p668_p11 = pneg %p667_p10 }
  0x16   : > { %p673_p13 = pnand %p671_p12, %p668_p11 }
  0x18   : > { %676 = shalt.err (!%p673_p13)
}
  0x19   : > { %s677_s6 = scalar_lea.vmem %s129_s21, 2048  ;;  %p685_p6 = scmp.lt.s32.totalorder %s129_s21, %s129_s21 }
  0x1a   : > { %p678_p0 = scmp.ne.s32.totalorder %s129_s21, %s677_s6  ;;  %p686_p1 = scmp.lt.s32.totalorder %s677_s6, %s677_s6 }
  0x1c   : > { %p680_p2 = pnand %p678_p0, %p666_p9  ;;  %p687_p4 = por %p686_p1, %p685_p6 }
  0x1e   : > { %p681_p3 = pneg %p680_p2 }
  0x20   : > { %p688_p5 = pnand %p687_p4, %p681_p3 }
  0x22   : > { %691 = shalt.err (!%p688_p5)
}
  0x23   : > { %s763_s7 = smov 64   ;;  %s764_s8 = smov 4  }
  0x24   : > { %596 = dma.hbm_to_vmem [thread:$0]  (!%p829_p7), %s944_s1, 2048, %s129_s21, [#allocation5], %s763_s7, %s763_s7, %s764_s8  }
  0x25   : > { %p22_p8 = scmp.eq.s32.totalorder %s21_s25, 0  ;;  %p31_p9 = scmp.ne.s32.totalorder %s756_s14, %s752_s13 }
  0x26   : > { %p32_p1 = scmp.eq.s32.totalorder %s760_s15, 0  ;;  %p602_p4 = scmp.lt.s32.totalorder %s760_s15, 2 }
  0x27   : > { %s860_s11 = scalar_select %p22_p8, %s756_s14, %s24_s24  }
  0x28   : > { %p33_p5 = por %p32_p1, %p31_p9  ;;  %s145_s12 = sand.u32 1, %s756_s14  }
  0x29   : > { %s515_s20 = sshll.u32 %s145_s12, 4  ;;  %s542_s26 = sshll.u32 %s760_s15, 8 }
  0x2a   : > { %s867_s29 = scalar_lea.hbm %s943_s0, %s542_s26  ;;  %s149_s21 = scalar_lea.vmem [#allocation2], %s515_s20 }
  0x2b   : > { %s157_s22 = sshll.u32 %s149_s21, 4  ;;  %p871_p7 = pnand %p602_p4, %p33_p5  ;;  %s869_s22 = int_to_ptr.vmem [resolvable:$true] %s157_s22 }
  0x2c   : > { %s146_s25 = scalar_lea.sflag [#allocation3], %s145_s12  ;;  %s692_s30 = scalar_lea.hbm %s867_s29, 256 }
  0x2d   : > { %p693_p10 = scmp.ne.s32.totalorder %s867_s29, %s692_s30  ;;  %p694_p11 = pneg %p871_p7 }
  0x2e   : > { %s697_s6 = scalar_lea.hbm %s943_s0, 512  ;;  %p698_p0 = scmp.lt.u32.totalorder %s867_s29, %s943_s0 }
  0x2f   : > { %p695_p12 = pnand %p694_p11, %p693_p10  ;;  %p699_p2 = scmp.lt.u32.totalorder %s697_s6, %s692_s30 }
  0x30   : > { %p701_p6 = scmp.lt.u32.totalorder %s692_s30, %s867_s29 }
  0x31   : > { %p696_p13 = pneg %p695_p12  ;;  %p700_p3 = por %p699_p2, %p698_p0 }
  0x33   : > { %p702_p8 = por %p701_p6, %p700_p3 }
  0x35   : > { %p703_p9 = pnand %p702_p8, %p696_p13 }
  0x37   : > { %706 = shalt.err (!%p703_p9)
}
  0x38   : > { %s707_s9 = scalar_lea.vmem %s869_s22, 256  ;;  %s765_s10 = smov [#allocation2]  }
  0x39   : > { %p708_p1 = scmp.ne.s32.totalorder %s869_s22, %s707_s9  ;;  %s712_s12 = sshll.u32 %s765_s10, 4  ;;  %s713_s12 = int_to_ptr.vmem [resolvable:$false] %s712_s12 }
  0x3a   : > { %s714_s20 = scalar_lea.vmem %s713_s12, 512  ;;  %p715_p10 = scmp.lt.s32.totalorder %s869_s22, %s713_s12 }
  0x3b   : > { %p710_p4 = pnand %p708_p1, %p694_p11  ;;  %p716_p12 = scmp.lt.s32.totalorder %s714_s20, %s707_s9 }
  0x3d   : > { %p711_p5 = pneg %p710_p4  ;;  %p717_p0 = por %p716_p12, %p715_p10 }
  0x3f   : > { %p718_p2 = pnand %p717_p0, %p711_p5 }
  0x41   : > { %721 = shalt.err (!%p718_p2)
}
  0x42   : > { %600 = dma.hbm_to_vmem [thread:$0]  (!%p871_p7), %s867_s29, 256, %s869_s22, %s146_s25  }
  0x43   : > { %p956_p13 = scmp.ne.s32.totalorder %s953_s19, 0 }
  0x44   : > { %s168_s26 = sand.u32 (!%p956_p13), 1, %s752_s13   ;;  %p957_p11 = scmp.ne.s32.totalorder (!%p956_p13), %s952_s18, 0 }
  0x45   : > { %166 = sbr.rel (%p956_p13) target bundleno = 467 (0x1d3), region = 32  ;;  %s903_s27 = sshll.u32 (!%p956_p13), %s168_s26, 4 }
  0x46   : > { %s169_s28 = scalar_lea.sflag (!%p956_p13), [#allocation3], %s168_s26  ;;  %s172_s21 = scalar_lea.vmem (!%p956_p13), [#allocation2], %s903_s27 }
  0x4c   : > { %739 = dma.done.wait (%p957_p11), %s169_s28, 256  }
  0x4d   : > { %741 = vsyncadd (%p957_p11), %s169_s28, 4294967040  ;;  %p958_p3 = scmp.ne.s32.totalorder %s951_s17, 0 }
  0x4f   : > { %743 = dma.done.wait (%p958_p3), [#allocation5], 2048  }
  0x50   : > { %745 = vsyncadd (%p958_p3), [#allocation5], 4294965248  ;;  %v640_v0 = vld [vmem:[#allocation4 + $0x40] sm:$0xff]   ;;  %v642_v2 = vld [vmem:[#allocation4 + $0x48] sm:$0xff]   ;;  %s766_s17 = smov 126   ;;  %s521_s18 = sshll.u32 %s510_s16, 2 }
  0x51   : > { %v641_v1 = vld [vmem:[#allocation4] sm:$0xff]   ;;  %543 = vmatprep.subr.bf16.mxu0 %v640_v0  ;;  %571 = vmatprep.subr.bf16.mxu1 %v640_v0  ;;  %v643_v3 = vld [vmem:[#allocation4 + $0x8] sm:$0xff]   ;;  %v644_v4 = vld [vmem:[#allocation4 + $0x50] sm:$0xff]   ;;  %p200_p7 = scmp.lt.s32.totalorder %s521_s18, 7  ;;  %vm428_vm0 = vcmask 15360  }
  0x52   : > { %544 = vmatpush3.bf16.msra.mxu0 %v641_v1  ;;  %579 = vmatpush3.bf16.msra.mxu1 %v641_v1  ;;  %v645_v5 = vld [vmem:[#allocation4 + $0x10] sm:$0xff]   ;;  %v646_v6 = vld [vmem:[#allocation4 + $0x58] sm:$0xff]   ;;  %v648_v8 = vld [vmem:[#allocation4 + $0x60] sm:$0xff]  }
  0x53   : > { %545 = vmatprep.subr.bf16.mxu0 %v642_v2  ;;  %572 = vmatprep.subr.bf16.mxu1 %v642_v2  ;;  %v647_v7 = vld [vmem:[#allocation4 + $0x18] sm:$0xff]   ;;  %v649_v9 = vld [vmem:[#allocation4 + $0x20] sm:$0xff]   ;;  %v650_v10 = vld [vmem:[#allocation4 + $0x68] sm:$0xff]   ;;  %s964_s18 = smov (!%p200_p7, %s521_s18), 7 }
  0x54   : > { %v207_v11 = vld [vmem:[%s172_s21 + $0x8] sm:$0xff]  ;;  %v652_v15 = vld [vmem:[#allocation4 + $0x70] sm:$0xff]   ;;  %v539_v44 = vld [vmem:[%s945_s2] ss:$0 sm:$0xff]  ;;  %s522_s22 = sshll.u32 %s964_s18, 3 }
  0x55   : > { %v209_v12 = vunpack.c.l.s8.bf16 %v207_v11  ;;  %v211_v13 = vunpack.c.h.s8.bf16 %v207_v11  ;;  %v651_v14 = vld [vmem:[#allocation4 + $0x28] sm:$0xff]   ;;  %v653_v16 = vld [vmem:[#allocation4 + $0x30] sm:$0xff]   ;;  %v654_v17 = vld [vmem:[#allocation4 + $0x78] sm:$0xff]   ;;  %s203_s24 = scalar_lea.vmem %s946_s3, %s522_s22 }
  0x56   : > { %546 = vmatpush3.bf16.msra.mxu0 %v643_v3  ;;  %580 = vmatpush3.bf16.msra.mxu1 %v643_v3  ;;  %v655_v18 = vld [vmem:[#allocation4 + $0x38] sm:$0xff]   ;;  %v206_v19 = vld [vmem:[%s172_s21] sm:$0xff] }
  0x57   : > { %547 = vmatprep.subr.bf16.mxu0 %v644_v4  ;;  %573 = vmatprep.subr.bf16.mxu1 %v644_v4  ;;  %v208_v20 = vunpack.c.l.s8.bf16 %v206_v19  ;;  %v210_v21 = vunpack.c.h.s8.bf16 %v206_v19 }
  0x58   : > { %372 = vmatprep.mubr.bf16.mxu0 %v209_v12  ;;  %380 = vmatprep.mubr.bf16.mxu1 %v211_v13 }
  0x5a   : > { %548 = vmatpush3.bf16.msra.mxu0 %v645_v5  ;;  %581 = vmatpush3.bf16.msra.mxu1 %v645_v5 }
  0x5b   : > { %549 = vmatprep.subr.bf16.mxu0 %v646_v6  ;;  %574 = vmatprep.subr.bf16.mxu1 %v646_v6 }
  0x5e   : > { %550 = vmatpush3.bf16.msra.mxu0 %v647_v7  ;;  %582 = vmatpush3.bf16.msra.mxu1 %v647_v7 }
  0x5f   : > { %551 = vmatprep.subr.bf16.mxu0 %v648_v8  ;;  %575 = vmatprep.subr.bf16.mxu1 %v648_v8 }
  0x62   : > { %552 = vmatpush3.bf16.msra.mxu0 %v649_v9  ;;  %583 = vmatpush3.bf16.msra.mxu1 %v649_v9 }
  0x63   : > { %553 = vmatprep.subr.bf16.mxu0 %v650_v10  ;;  %576 = vmatprep.subr.bf16.mxu1 %v650_v10 }
  0x66   : > { %554 = vmatpush3.bf16.msra.mxu0 %v651_v14  ;;  %584 = vmatpush3.bf16.msra.mxu1 %v651_v14 }
  0x67   : > { %555 = vmatprep.subr.bf16.mxu0 %v652_v15  ;;  %577 = vmatprep.subr.bf16.mxu1 %v652_v15 }
  0x6a   : > { %556 = vmatpush3.bf16.msra.mxu0 %v653_v16  ;;  %585 = vmatpush3.bf16.msra.mxu1 %v653_v16 }
  0x6b   : > { %557 = vmatprep.subr.bf16.mxu0 %v654_v17  ;;  %578 = vmatprep.subr.bf16.mxu1 %v654_v17 }
  0x6e   : > { %558 = vmatpush3.bf16.msra.mxu0 %v655_v18  ;;  %586 = vmatpush3.bf16.msra.mxu1 %v655_v18 }
  0x71   : > { %373 = vmatmul.mubr.bf16.vlgmr.msra.gmra.mrb[0].mxu0 %v208_v20  ;;  %381 = vmatmul.mubr.bf16.vlgmr.msra.gmra.mrb[0].mxu1 %v210_v21 }
 0x144   : > { %v559_v22 = vpop.f32.mrb[0].mxu0  ;;  %v565_v23 = vpop.f32.mrb[0].mxu1 }
 0x145   : > { %v560_v24 = vpop.f32.mrb[1].mxu0  ;;  %v566_v25 = vpop.f32.mrb[1].mxu1 }
 0x146   : > { %v561_v26 = vadd.f32 %v560_v24, %v559_v22  ;;  %v567_v27 = vadd.f32 %v566_v25, %v565_v23  ;;  %v562_v28 = vpop.f32.mrb[2].mxu0  ;;  %v568_v29 = vpop.f32.mrb[2].mxu1 }
 0x147   : > { %v563_v30 = vpop.f32.mrb[3].mxu0  ;;  %v569_v31 = vpop.f32.mrb[3].mxu1 }
 0x148   : > { %v564_v32 = vadd.f32 %v563_v30, %v562_v28  ;;  %v570_v33 = vadd.f32 %v569_v31, %v568_v29  ;;  %393 = vrot.lane.b32.xlu1 %v567_v27, %s766_s17  ;;  %389 = vrot.lane.b32.xlu0 %v561_v26, %s766_s17 }
 0x14c   : > { %395 = vrot.lane.b32.xlu1 %v570_v33, %s766_s17  ;;  %391 = vrot.lane.b32.xlu0 %v564_v32, %s766_s17 }
 0x1ba   : > { %v394_v34 = vpop.permute.xlu1 %393  ;;  %v390_v35 = vpop.permute.xlu0 %389 }
 0x1bb   : > { %v399_v36 = vmax.f32 %v394_v34, 1.0  ;;  %v397_v37 = vmax.f32 %v390_v35, 1.0  ;;  %vm405_vm1 = vcmp.gt.f32.partialorder %v390_v35, 0.0  ;;  %vm407_vm3 = vcmp.gt.f32.partialorder %v394_v34, 0.0 }
 0x1bd   : > { %656 = vrcp.f32 %v399_v36 }
 0x1be   : > { %658 = vrcp.f32 %v397_v37  ;;  %v396_v38 = vpop.permute.xlu1 %395  ;;  %v392_v39 = vpop.permute.xlu0 %391 }
 0x1bf   : > { %v400_v40 = vmax.f32 %v396_v38, 1.0  ;;  %v398_v41 = vmax.f32 %v392_v39, 1.0  ;;  %vm406_vm2 = vcmp.gt.f32.partialorder %v392_v39, 0.0  ;;  %vm408_vm4 = vcmp.gt.f32.partialorder %v396_v38, 0.0 }
 0x1c1   : > { %660 = vrcp.f32 %v400_v40 }
 0x1c2   : > { %662 = vrcp.f32 %v398_v41 }
 0x1c7   : > { %v657_v42 = vpop.eup %656 }
 0x1c8   : > { %v659_v43 = vpop.eup %658  ;;  %v411_v46 = vmul.f32 %v657_v42, %v567_v27 }
 0x1c9   : > { %v409_v45 = vmul.f32 %v659_v43, %v561_v26 }
 0x1ca   : > { %v422_v53 = vmul.f32 %v539_v44, %v411_v46 }
 0x1cb   : > { %v661_v47 = vpop.eup %660  ;;  %v420_v48 = vmul.f32 %v539_v44, %v409_v45 }
 0x1cc   : > { %v663_v49 = vpop.eup %662  ;;  %v412_v50 = vmul.f32 %v661_v47, %v570_v33  ;;  %v426_v57 = vsel %vm407_vm3, %v422_v53, 0.0 }
 0x1cd   : > { %v424_v51 = vsel %vm405_vm1, %v420_v48, 0.0  ;;  %v410_v52 = vmul.f32 %v663_v49, %v564_v32  ;;  %431 = vst.msk [vmem:[%s203_s24 + $0x10] sm:$0xff] %vm428_vm0, %v426_v57 }
 0x1ce   : > { %429 = vst.msk [vmem:[%s203_s24] sm:$0xff] %vm428_vm0, %v424_v51  ;;  %v423_v54 = vmul.f32 %v539_v44, %v412_v50 }
 0x1cf   : > { %v421_v55 = vmul.f32 %v539_v44, %v410_v52 }
 0x1d0   : > { %v427_v58 = vsel %vm408_vm4, %v423_v54, 0.0 }
 0x1d1   : > { %v425_v56 = vsel %vm406_vm2, %v421_v55, 0.0  ;;  %432 = vst.msk [vmem:[%s203_s24 + $0x18] sm:$0xff] %vm428_vm0, %v427_v58 }
 0x1d2   : > { %430 = vst.msk [vmem:[%s203_s24 + $0x8] sm:$0xff] %vm428_vm0, %v425_v56 }
 0x1d3 PF: > { %p14_p6 = scmp.ge.s32.totalorder %s834_s23, 4   ;;  %s959_s12 = smov %s752_s13 }
 0x1d4   : > { %s960_s13 = smov %s756_s14  ;;  %s961_s14 = smov %s860_s11 }
 0x1d5   : > { %s962_s15 = smov %s834_s23  ;;  %16 = sbr.rel (!%p14_p6) target bundleno = 4 (0x4), region = 76 }
 0x1dc   :  { %455 = vsyncpa [#allocation3], 1 }
 0x1dd   :  { %457 = vsyncpa [#allocation3 + $0x1], 1 }
 0x1de   :  { %458 = vsyncpa [#allocation5], 1 }

</bundles_post_ra>
